<compile_context>
chip_gen: v6e
topology: v6e:2x2x1
jax: 0.10.0
libtpu: 0.0.40
codegen_flags: <defaults>
</compile_context>

<pallas_src>
import jax
import jax.numpy as jnp
from jax.experimental import pallas as pl
from jax.experimental.pallas import tpu as pltpu


def net4_kernel(x_ref, w_all_ref, b_all_ref, wo_t_ref, bo_ref, o_ref):
    """One batch tile: 4x (matmul + bias + ReLU) in f32, then a lane-dense head."""
    h = x_ref[...].astype(jnp.float32)          # (tile_b, D), f32 activations

    # Hidden layers, fully unrolled; weights/biases are VMEM-resident f32.
    for l in range(4):
        y = jnp.dot(h, w_all_ref[l], preferred_element_type=jnp.float32)
        h = jnp.maximum(y + b_all_ref[l], 0.0)
        # TODO(synk): training-mode dropout (PRNG mask + 1/(1-p) scaling) not
        # emitted -- eval() semantics => identity.

    # Output layer computed transposed so the store is lane-dense:
    #   out[0, b] = sum_k wo_t[0, k] * h[b, k]   -> shape (1, tile_b)
    out = jax.lax.dot_general(
        wo_t_ref[...], h,
        dimension_numbers=(((1,), (1,)), ((), ())),
        preferred_element_type=jnp.float32)
    out = out + bo_ref[...]                      # (1, 1) broadcasts over lanes
    # act_fn(F.relu(.)) == relu(relu(.)) == relu(.)
    o_ref[...] = jnp.maximum(out, 0.0)


def _round_up(n, m):
    return ((n + m - 1) // m) * m


def _pad_to(a, shape):
    return jnp.pad(a, [(0, s - d) for d, s in zip(a.shape, shape)])


def net4_forward(x, params, *, tile_b=4096, x_dtype=jnp.float32, training=False):
    """Fused Net4 forward. x: [B, n_features] -> [B, 1] float32 (eval mode)."""
    if training:
        # TODO(synk): training-mode dropout not implemented in the kernel.
        raise NotImplementedError("net4_forward implements eval() semantics only")

    B, F = x.shape

    # --- Pack the hidden layers into two resident stacked operands ----------
    ws = [params["w1"], params["w2"], params["w3"], params["w4"]]
    bs = [params["b1"], params["b2"], params["b3"], params["b4"]]
    D = max([F] + [w.shape[1] for w in ws])      # common square size (20 here)
    w_all = jnp.stack([_pad_to(w.astype(jnp.float32), (D, D)) for w in ws])
    b_all = jnp.stack([_pad_to(b.astype(jnp.float32), (1, D)) for b in bs])
    wo_t = _pad_to(params["wo"].T.astype(jnp.float32), (1, D))   # (1, D)
    bo = params["bo"].astype(jnp.float32)                        # (1, 1)

    # --- Batch tiling --------------------------------------------------------
    # Single grid step whenever the (sublane-rounded) batch fits in one tile;
    # only split (and engage megacore "parallel") for genuinely large batches.
    sub = 16 if jnp.dtype(x_dtype) == jnp.dtype(jnp.bfloat16) else 8
    if _round_up(B, sub) <= tile_b:
        tile_b = _round_up(B, sub)
        num_tiles = 1
    else:
        tile_b = _round_up(tile_b, 128)
        num_tiles = pl.cdiv(B, tile_b)
    b_pad = num_tiles * tile_b

    x_p = x
    if b_pad != B or D != F:
        x_p = jnp.pad(x, ((0, b_pad - B), (0, D - F)))
    x_p = x_p.astype(x_dtype)

    # --- Scoped-VMEM guard for very large tiles (v5e default is 16 MiB) ------
    itemsize = jnp.dtype(x_dtype).itemsize
    bufs = 2 if num_tiles > 1 else 1
    vmem_est = (bufs * tile_b * _round_up(D, 128) * itemsize     # x tiles
                + bufs * _round_up(tile_b, 128) * 4              # out tiles
                + 2 * 1024 * 1024)                               # weights+slack
    vmem_limit = None
    if vmem_est > 12 * 1024 * 1024:
        vmem_limit = int(min(vmem_est + vmem_est // 2, 48 * 1024 * 1024))

    # --- Cost estimate (keeps XLA from treating the tiny call as heavyweight)
    macs = sum(int(w.shape[0]) * int(w.shape[1]) for w in ws) + int(params["wo"].size)
    cost = pl.CostEstimate(
        flops=int(2 * B * macs),
        transcendentals=0,
        bytes_accessed=int(x_p.size * itemsize + w_all.size * 4 + b_all.size * 4
                           + wo_t.size * 4 + bo.size * 4 + b_pad * 4))

    # Weights / biases: constant index_map => resident in VMEM across steps.
    resident = lambda a: pl.BlockSpec(a.shape, lambda i: (0,) * a.ndim)

    out = pl.pallas_call(
        net4_kernel,
        out_shape=jax.ShapeDtypeStruct((1, b_pad), jnp.float32),
        grid=(num_tiles,),
        in_specs=[
            pl.BlockSpec((tile_b, D), lambda i: (i, 0)),   # x: batch-gridded
            resident(w_all), resident(b_all),
            resident(wo_t), resident(bo),
        ],
        out_specs=pl.BlockSpec((1, tile_b), lambda i: (0, i)),   # lane-dense
        compiler_params=pltpu.CompilerParams(
            dimension_semantics=(("parallel",) if num_tiles > 1 else ("arbitrary",)),
            vmem_limit_bytes=vmem_limit),
        cost_estimate=cost,
    )(x_p, w_all, b_all, wo_t, bo)

    return out[0, :B].reshape(B, 1)


def init_params(key, n_features=20, nh1=20, nh2=20, nh3=20, nh4=20):
    """Deterministic init mimicking nn.Linear (uniform(-1/sqrt(fan_in), ...))."""
    def linear(key, fan_in, fan_out):
        kw, kb = jax.random.split(key)
        bound = 1.0 / jnp.sqrt(fan_in)
        w = jax.random.uniform(kw, (fan_in, fan_out), jnp.float32, -bound, bound)
        b = jax.random.uniform(kb, (1, fan_out), jnp.float32, -bound, bound)
        return w, b

    keys = jax.random.split(key, 5)
    w1, b1 = linear(keys[0], n_features, nh1)
    w2, b2 = linear(keys[1], nh1, nh2)
    w3, b3 = linear(keys[2], nh2, nh3)
    w4, b4 = linear(keys[3], nh3, nh4)
    wo, bo = linear(keys[4], nh4, 1)
    return {"w1": w1, "b1": b1, "w2": w2, "b2": b2, "w3": w3, "b3": b3,
            "w4": w4, "b4": b4, "wo": wo, "bo": bo}


def net4_reference(x, p):
    """Pure-JAX reference (eval-mode) for correctness check."""
    h = jnp.maximum(x @ p["w1"] + p["b1"], 0.0)
    h = jnp.maximum(h @ p["w2"] + p["b2"], 0.0)
    h = jnp.maximum(h @ p["w3"] + p["b3"], 0.0)
    h = jnp.maximum(h @ p["w4"] + p["b4"], 0.0)
    return jnp.maximum(h @ p["wo"] + p["bo"], 0.0)


if __name__ == "__main__":
    key = jax.random.PRNGKey(0)
    k_params, k_x = jax.random.split(key)

    # Small batch, non-multiple of 8/16/128 -> exercises sublane rounding & padding.
    batch, n_features = 300, 20
    params = init_params(k_params, n_features=n_features)
    x = jax.random.normal(k_x, (batch, n_features), dtype=jnp.float32)

    ref = net4_reference(x, params)

    # Default path: single grid step (tile covers the whole batch), f32 x.
    out = jax.block_until_ready(net4_forward(x, params))
    assert out.shape == (batch, 1), out.shape
    assert jnp.allclose(out, ref, atol=1e-4, rtol=1e-4), "f32 single-tile mismatch"

    # Forced multi-tile grid (3 steps of 128 rows): padding + parallel batch grid.
    out_mt = jax.block_until_ready(net4_forward(x, params, tile_b=128))
    assert out_mt.shape == (batch, 1), out_mt.shape
    assert jnp.allclose(out_mt, ref, atol=1e-4, rtol=1e-4), "multi-tile mismatch"

    # bf16 x at the HBM boundary; activations/weights stay f32 inside the kernel.
    out_bf16 = jax.block_until_ready(
        net4_forward(x, params, x_dtype=jnp.bfloat16))
    assert out_bf16.shape == (batch, 1), out_bf16.shape
    assert jnp.allclose(out_bf16, ref, atol=5e-2, rtol=5e-2), "bf16-x mismatch"

    print("KERNEL_OK")
</pallas_src>

<mosaic_0001>
module attributes {stable_mosaic.version = 11 : i64} {
  func.func @net4_kernel(%arg0: i32, %arg1: memref<304x20xf32, #tpu.memory_space<vmem>>, %arg2: memref<4x20x20xf32, #tpu.memory_space<vmem>>, %arg3: memref<4x1x20xf32, #tpu.memory_space<vmem>>, %arg4: memref<1x20xf32, #tpu.memory_space<vmem>>, %arg5: memref<1x1xf32, #tpu.memory_space<vmem>>, %arg6: memref<1x304xf32, #tpu.memory_space<vmem>>) attributes {dimension_semantics = [#tpu.dimension_semantics<arbitrary>], iteration_bounds = array<i64: 1>, scalar_prefetch = 0 : i64, scratch_operands = 0 : i64, tpu.core_type = #tpu.core_type<tc>, window_params = [{transform_indices = @transform_0, window_bounds = array<i64: 304, 20>}, {pipeline_mode = #tpu.pipeline_mode<synchronous>, transform_indices = @transform_1, window_bounds = array<i64: 4, 20, 20>}, {pipeline_mode = #tpu.pipeline_mode<synchronous>, transform_indices = @transform_2, window_bounds = array<i64: 4, 1, 20>}, {pipeline_mode = #tpu.pipeline_mode<synchronous>, transform_indices = @transform_3, window_bounds = array<i64: 1, 20>}, {pipeline_mode = #tpu.pipeline_mode<synchronous>, transform_indices = @transform_4, window_bounds = array<i64: 1, 1>}, {transform_indices = @transform_5, window_bounds = array<i64: 1, 304>}]} {
    %c0 = arith.constant 0 : index
    %c0_0 = arith.constant 0 : index
    %0 = vector.load %arg1[%c0, %c0_0] : memref<304x20xf32, #tpu.memory_space<vmem>>, vector<304x20xf32>
    %c0_1 = arith.constant 0 : index
    %c0_2 = arith.constant 0 : index
    %c0_3 = arith.constant 0 : index
    %1 = vector.load %arg2[%c0_1, %c0_2, %c0_3] : memref<4x20x20xf32, #tpu.memory_space<vmem>>, vector<1x20x20xf32>
    %2 = vector.shape_cast %1 : vector<1x20x20xf32> to vector<20x20xf32>
    %cst = arith.constant dense<0.000000e+00> : vector<304x20xf32>
    %3 = tpu.matmul %0, %2, %cst {dimension_numbers = #tpu.dot_dimension_numbers<[1], [0], [0], [1], [0, 0, 1, 1], [], []>} : vector<304x20xf32>, vector<20x20xf32>, vector<304x20xf32> -> vector<304x20xf32>
    %c0_4 = arith.constant 0 : index
    %c0_5 = arith.constant 0 : index
    %c0_6 = arith.constant 0 : index
    %4 = vector.load %arg3[%c0_4, %c0_5, %c0_6] : memref<4x1x20xf32, #tpu.memory_space<vmem>>, vector<1x1x20xf32>
    %5 = vector.shape_cast %4 : vector<1x1x20xf32> to vector<1x20xf32>
    %6 = vector.broadcast %5 : vector<1x20xf32> to vector<304x20xf32>
    %7 = arith.addf %3, %6 : vector<304x20xf32>
    %cst_7 = arith.constant 0.000000e+00 : f32
    %8 = vector.broadcast %cst_7 : f32 to vector<304x20xf32>
    %9 = arith.maximumf %7, %8 : vector<304x20xf32>
    %c1 = arith.constant 1 : index
    %c0_8 = arith.constant 0 : index
    %c0_9 = arith.constant 0 : index
    %10 = vector.load %arg2[%c1, %c0_8, %c0_9] : memref<4x20x20xf32, #tpu.memory_space<vmem>>, vector<1x20x20xf32>
    %11 = vector.shape_cast %10 : vector<1x20x20xf32> to vector<20x20xf32>
    %cst_10 = arith.constant dense<0.000000e+00> : vector<304x20xf32>
    %12 = tpu.matmul %9, %11, %cst_10 {dimension_numbers = #tpu.dot_dimension_numbers<[1], [0], [0], [1], [0, 0, 1, 1], [], []>} : vector<304x20xf32>, vector<20x20xf32>, vector<304x20xf32> -> vector<304x20xf32>
    %c1_11 = arith.constant 1 : index
    %c0_12 = arith.constant 0 : index
    %c0_13 = arith.constant 0 : index
    %13 = vector.load %arg3[%c1_11, %c0_12, %c0_13] : memref<4x1x20xf32, #tpu.memory_space<vmem>>, vector<1x1x20xf32>
    %14 = vector.shape_cast %13 : vector<1x1x20xf32> to vector<1x20xf32>
    %15 = vector.broadcast %14 : vector<1x20xf32> to vector<304x20xf32>
    %16 = arith.addf %12, %15 : vector<304x20xf32>
    %cst_14 = arith.constant 0.000000e+00 : f32
    %17 = vector.broadcast %cst_14 : f32 to vector<304x20xf32>
    %18 = arith.maximumf %16, %17 : vector<304x20xf32>
    %c2 = arith.constant 2 : index
    %c0_15 = arith.constant 0 : index
    %c0_16 = arith.constant 0 : index
    %19 = vector.load %arg2[%c2, %c0_15, %c0_16] : memref<4x20x20xf32, #tpu.memory_space<vmem>>, vector<1x20x20xf32>
    %20 = vector.shape_cast %19 : vector<1x20x20xf32> to vector<20x20xf32>
    %cst_17 = arith.constant dense<0.000000e+00> : vector<304x20xf32>
    %21 = tpu.matmul %18, %20, %cst_17 {dimension_numbers = #tpu.dot_dimension_numbers<[1], [0], [0], [1], [0, 0, 1, 1], [], []>} : vector<304x20xf32>, vector<20x20xf32>, vector<304x20xf32> -> vector<304x20xf32>
    %c2_18 = arith.constant 2 : index
    %c0_19 = arith.constant 0 : index
    %c0_20 = arith.constant 0 : index
    %22 = vector.load %arg3[%c2_18, %c0_19, %c0_20] : memref<4x1x20xf32, #tpu.memory_space<vmem>>, vector<1x1x20xf32>
    %23 = vector.shape_cast %22 : vector<1x1x20xf32> to vector<1x20xf32>
    %24 = vector.broadcast %23 : vector<1x20xf32> to vector<304x20xf32>
    %25 = arith.addf %21, %24 : vector<304x20xf32>
    %cst_21 = arith.constant 0.000000e+00 : f32
    %26 = vector.broadcast %cst_21 : f32 to vector<304x20xf32>
    %27 = arith.maximumf %25, %26 : vector<304x20xf32>
    %c3 = arith.constant 3 : index
    %c0_22 = arith.constant 0 : index
    %c0_23 = arith.constant 0 : index
    %28 = vector.load %arg2[%c3, %c0_22, %c0_23] : memref<4x20x20xf32, #tpu.memory_space<vmem>>, vector<1x20x20xf32>
    %29 = vector.shape_cast %28 : vector<1x20x20xf32> to vector<20x20xf32>
    %cst_24 = arith.constant dense<0.000000e+00> : vector<304x20xf32>
    %30 = tpu.matmul %27, %29, %cst_24 {dimension_numbers = #tpu.dot_dimension_numbers<[1], [0], [0], [1], [0, 0, 1, 1], [], []>} : vector<304x20xf32>, vector<20x20xf32>, vector<304x20xf32> -> vector<304x20xf32>
    %c3_25 = arith.constant 3 : index
    %c0_26 = arith.constant 0 : index
    %c0_27 = arith.constant 0 : index
    %31 = vector.load %arg3[%c3_25, %c0_26, %c0_27] : memref<4x1x20xf32, #tpu.memory_space<vmem>>, vector<1x1x20xf32>
    %32 = vector.shape_cast %31 : vector<1x1x20xf32> to vector<1x20xf32>
    %33 = vector.broadcast %32 : vector<1x20xf32> to vector<304x20xf32>
    %34 = arith.addf %30, %33 : vector<304x20xf32>
    %cst_28 = arith.constant 0.000000e+00 : f32
    %35 = vector.broadcast %cst_28 : f32 to vector<304x20xf32>
    %36 = arith.maximumf %34, %35 : vector<304x20xf32>
    %c0_29 = arith.constant 0 : index
    %c0_30 = arith.constant 0 : index
    %37 = vector.load %arg4[%c0_29, %c0_30] : memref<1x20xf32, #tpu.memory_space<vmem>>, vector<1x20xf32>
    %cst_31 = arith.constant dense<0.000000e+00> : vector<1x304xf32>
    %38 = tpu.matmul %37, %36, %cst_31 {dimension_numbers = #tpu.dot_dimension_numbers<[1], [1], [0], [0], [0, 0, 1, 0], [], []>} : vector<1x20xf32>, vector<304x20xf32>, vector<1x304xf32> -> vector<1x304xf32>
    %c0_32 = arith.constant 0 : index
    %c0_33 = arith.constant 0 : index
    %39 = vector.load %arg5[%c0_32, %c0_33] : memref<1x1xf32, #tpu.memory_space<vmem>>, vector<1x1xf32>
    %40 = vector.broadcast %39 : vector<1x1xf32> to vector<1x304xf32>
    %41 = arith.addf %38, %40 : vector<1x304xf32>
    %cst_34 = arith.constant 0.000000e+00 : f32
    %42 = vector.broadcast %cst_34 : f32 to vector<1x304xf32>
    %43 = arith.maximumf %41, %42 : vector<1x304xf32>
    %c0_35 = arith.constant 0 : index
    %c0_36 = arith.constant 0 : index
    %44 = vector.load %arg6[%c0_35, %c0_36] : memref<1x304xf32, #tpu.memory_space<vmem>>, vector<1x304xf32>
    tpu.vector_store %arg6[%c0_35, %c0_36], %43 {strides = array<i32>} : memref<1x304xf32, #tpu.memory_space<vmem>>, vector<1x304xf32>,
    return
  }
  func.func @transform_0(%arg0: i32) -> (i32, i32) {
    %c0_i32 = arith.constant 0 : i32
    %c0_i32_0 = arith.constant 0 : i32
    return %arg0, %c0_i32 : i32, i32
  }
  func.func @transform_1(%arg0: i32) -> (i32, i32, i32) {
    %c0_i32 = arith.constant 0 : i32
    %c0_i32_0 = arith.constant 0 : i32
    %c0_i32_1 = arith.constant 0 : i32
    %c0_i32_2 = arith.constant 0 : i32
    return %c0_i32, %c0_i32_0, %c0_i32_1 : i32, i32, i32
  }
  func.func @transform_2(%arg0: i32) -> (i32, i32, i32) {
    %c0_i32 = arith.constant 0 : i32
    %c0_i32_0 = arith.constant 0 : i32
    %c0_i32_1 = arith.constant 0 : i32
    %c0_i32_2 = arith.constant 0 : i32
    return %c0_i32, %c0_i32_0, %c0_i32_1 : i32, i32, i32
  }
  func.func @transform_3(%arg0: i32) -> (i32, i32) {
    %c0_i32 = arith.constant 0 : i32
    %c0_i32_0 = arith.constant 0 : i32
    %c0_i32_1 = arith.constant 0 : i32
    return %c0_i32, %c0_i32_0 : i32, i32
  }
  func.func @transform_4(%arg0: i32) -> (i32, i32) {
    %c0_i32 = arith.constant 0 : i32
    %c0_i32_0 = arith.constant 0 : i32
    %c0_i32_1 = arith.constant 0 : i32
    return %c0_i32, %c0_i32_0 : i32, i32
  }
  func.func @transform_5(%arg0: i32) -> (i32, i32) {
    %c0_i32 = arith.constant 0 : i32
    %c0_i32_0 = arith.constant 0 : i32
    return %c0_i32, %arg0 : i32, i32
  }
}

</mosaic_0001>

<bundles_post_ra>
// kernel: tpu_custom_call.1
= control target key start
LH: loop header
LB: loop body
LE: loop exit
PB: predicated region body
PF: predicated region fallthrough
CT: control target
= control target key end

     0   :  { %s3418_s0 = inlined_call_operand.vmem [shape: f32[304,20], index: 0, kind: input, shape index: {}]   ;;  %s3419_s1 = inlined_call_operand.vmem [shape: f32[4,20,20], index: 1, kind: input, shape index: {}]   ;;  %s3420_s2 = inlined_call_operand.vmem [shape: f32[4,1,20], index: 2, kind: input, shape index: {}]   ;;  %s3421_s3 = inlined_call_operand.vmem [shape: f32[1,20], index: 3, kind: input, shape index: {}]   ;;  %s3422_s4 = inlined_call_operand.<no memory space> [shape: f32[1,1], index: 4, kind: input, shape index: {}]   ;;  %s3423_s5 = inlined_call_operand.hbm [shape: f32[1,304], index: 5, kind: output, shape index: {}]  }
   0x1   :  { %v10_v0 = vstv %s3422_s4 }
   0x2   :  { %11 = vst [vmem:[#allocation2] sm:$0x1] %v10_v0 }
   0x3   :  { %v63_v1 = vld [vmem:[%s3419_s1 + $0x10] sm:$0xf]  ;;  %vm186_vm0 = vcmask 1043456   ;;  %v62_v2 = vld [vmem:[%s3419_s1 + $0x8] sm:$0xff]  ;;  %vm71_vm1 = vcmask 162816   ;;  %v23_v3 = vld [vmem:[%s3418_s0] sm:$0xff] }
   0x4   :  { %2484 = vmatprep.subr.msk.mxu0 %vm186_vm0, %v63_v1  ;;  %v61_v4 = vld [vmem:[%s3419_s1] sm:$0xff]  ;;  %2490 = vmatprep.mubr.msk.f32.mxu0 %vm71_vm1, %v23_v3  ;;  %v24_v5 = vld [vmem:[%s3418_s0 + $0x8] sm:$0xff]  ;;  %v25_v6 = vld [vmem:[%s3418_s0 + $0x10] sm:$0xff] }
   0x5   :  { %2485 = vmatpush3.msk.msra.mxu0 %vm186_vm0, %v63_v1  ;;  %v26_v7 = vld [vmem:[%s3418_s0 + $0x18] sm:$0xff]  ;;  %v27_v8 = vld [vmem:[%s3418_s0 + $0x20] sm:$0xff]  ;;  %v28_v9 = vld [vmem:[%s3418_s0 + $0x28] sm:$0xff] }
   0x6   :  { %2486 = vmatprep.subr.mxu0 %v62_v2  ;;  %v29_v10 = vld [vmem:[%s3418_s0 + $0x30] sm:$0xff] }
   0x7   :  { %2487 = vmatpush3.msra.mxu0 %v62_v2 }
   0x8   :  { %2488 = vmatprep.subr.mxu0 %v61_v4 }
   0x9   :  { %2489 = vmatpush3.msra.mxu0 %v61_v4 }
   0xa   :  { %2491 = vmatmul.mubr.msk.f32.vlgmr.msra.gmra.mxu0 %vm71_vm1, %v24_v5 }
   0xb   :  { %2493 = vmatprep.mubr.msk.f32.mxu0 %vm71_vm1, %v25_v6 }
   0xe   :  { %2494 = vmatmul.mubr.msk.f32.gmra.mxu0 %vm71_vm1, %v26_v7 }
   0xf   :  { %2496 = vmatprep.mubr.msk.f32.mxu0 %vm71_vm1, %v27_v8 }
  0x10   :  { %12 = vsyncpa [#allocation4], 0  ;;  %v30_v11 = vld [vmem:[%s3418_s0 + $0x38] sm:$0xff]  ;;  %v31_v12 = vld [vmem:[%s3418_s0 + $0x40] sm:$0xff]  ;;  %vm2780_vm2 = vmmov 0  }
  0x11   :  { %v32_v13 = vld [vmem:[%s3418_s0 + $0x48] sm:$0xff]  ;;  %v33_v14 = vld [vmem:[%s3418_s0 + $0x50] sm:$0xff]  ;;  %v34_v15 = vld [vmem:[%s3418_s0 + $0x58] sm:$0xff] }
  0x12   :  { %2497 = vmatmul.mubr.msk.f32.gmra.mxu0 %vm71_vm1, %v28_v9  ;;  %v35_v16 = vld [vmem:[%s3418_s0 + $0x60] sm:$0xff]  ;;  %v36_v17 = vld [vmem:[%s3418_s0 + $0x68] sm:$0xff]  ;;  %v37_v18 = vld [vmem:[%s3418_s0 + $0x70] sm:$0xff] }
  0x13   :  { %2499 = vmatprep.mubr.msk.f32.mxu0 %vm71_vm1, %v29_v10  ;;  %v38_v19 = vld [vmem:[%s3418_s0 + $0x78] sm:$0xff]  ;;  %v39_v20 = vld [vmem:[%s3418_s0 + $0x80] sm:$0xff]  ;;  %v40_v21 = vld [vmem:[%s3418_s0 + $0x88] sm:$0xff] }
  0x14   :  { %v41_v22 = vld [vmem:[%s3418_s0 + $0x90] sm:$0xff]  ;;  %v42_v23 = vld [vmem:[%s3418_s0 + $0x98] sm:$0xff]  ;;  %v43_v24 = vld [vmem:[%s3418_s0 + $0xa0] sm:$0xff] }
  0x15   :  { %v44_v25 = vld [vmem:[%s3418_s0 + $0xa8] sm:$0xff]  ;;  %v45_v26 = vld [vmem:[%s3418_s0 + $0xb0] sm:$0xff]  ;;  %v46_v27 = vld [vmem:[%s3418_s0 + $0xb8] sm:$0xff] }
  0x16   :  { %2500 = vmatmul.mubr.msk.f32.gmra.mxu0 %vm71_vm1, %v30_v11  ;;  %v47_v28 = vld [vmem:[%s3418_s0 + $0xc0] sm:$0xff]  ;;  %v48_v29 = vld [vmem:[%s3418_s0 + $0xc8] sm:$0xff]  ;;  %v49_v30 = vld [vmem:[%s3418_s0 + $0xd0] sm:$0xff] }
  0x17   :  { %2502 = vmatprep.mubr.msk.f32.mxu0 %vm71_vm1, %v31_v12  ;;  %v50_v31 = vld [vmem:[%s3418_s0 + $0xd8] sm:$0xff]  ;;  %v51_v32 = vld [vmem:[%s3418_s0 + $0xe0] sm:$0xff]  ;;  %v52_v33 = vld [vmem:[%s3418_s0 + $0xe8] sm:$0xff] }
  0x18   :  { %v53_v34 = vld [vmem:[%s3418_s0 + $0xf0] sm:$0xff]  ;;  %v54_v35 = vld [vmem:[%s3418_s0 + $0xf8] sm:$0xff]  ;;  %v55_v36 = vld [vmem:[%s3418_s0 + $0x100] sm:$0xff] }
  0x19   :  { %v56_v37 = vld [vmem:[%s3418_s0 + $0x108] sm:$0xff]  ;;  %v57_v38 = vld [vmem:[%s3418_s0 + $0x110] sm:$0xff]  ;;  %v58_v39 = vld [vmem:[%s3418_s0 + $0x118] sm:$0xff] }
  0x1a   :  { %2503 = vmatmul.mubr.msk.f32.gmra.mxu0 %vm71_vm1, %v32_v13  ;;  %v2109_v40 = vld [vmem:[%s3419_s1 + $0x28] sm:$0xf]  ;;  %v59_v41 = vld [vmem:[%s3418_s0 + $0x120] sm:$0xff]  ;;  %v2107_v44 = vld [vmem:[%s3419_s1 + $0x18] sm:$0xff] }
  0x1b   :  { %2505 = vmatprep.mubr.msk.f32.mxu0 %vm71_vm1, %v33_v14  ;;  %2547 = vmatprep.subr.msk.mxu1 %vm186_vm0, %v2109_v40  ;;  %v2108_v42 = vld [vmem:[%s3419_s1 + $0x20] sm:$0xff]  ;;  %v60_v43 = vld [vmem:[%s3418_s0 + $0x128] sm:$0xff]  ;;  %v2152_v46 = vld [vmem:[%s3419_s1 + $0x38] sm:$0xff] }
  0x1c   :  { %2548 = vmatpush3.msk.msra.mxu1 %vm186_vm0, %v2109_v40  ;;  %v2153_v45 = vld [vmem:[%s3419_s1 + $0x40] sm:$0xf] }
  0x1d   :  { %2549 = vmatprep.subr.mxu1 %v2108_v42  ;;  %2610 = vmatprep.subr.msk.mxu0 %vm186_vm0, %v2153_v45  ;;  %v3002_v47 = vld [vmem:[%s3420_s2] ss:$0 sm:$0xff] }
  0x1e   :  { %2506 = vmatmul.mubr.msk.f32.gmra.mxu0 %vm71_vm1, %v34_v15  ;;  %2550 = vmatpush3.msra.mxu1 %v2108_v42 }
  0x1f   :  { %2508 = vmatprep.mubr.msk.f32.mxu0 %vm71_vm1, %v35_v16  ;;  %2551 = vmatprep.subr.mxu1 %v2107_v44 }
  0x20   :  { %2552 = vmatpush3.msra.mxu1 %v2107_v44  ;;  %2611 = vmatpush3.msk.msra.mxu0 %vm186_vm0, %v2153_v45 }
  0x21   :  { %2612 = vmatprep.subr.mxu0 %v2152_v46 }
  0x22   :  { %2509 = vmatmul.mubr.msk.f32.gmra.mxu0 %vm71_vm1, %v36_v17 }
  0x23   :  { %2511 = vmatprep.mubr.msk.f32.mxu0 %vm71_vm1, %v37_v18  ;;  %2613 = vmatpush3.msra.mxu0 %v2152_v46 }
  0x26   :  { %2512 = vmatmul.mubr.msk.f32.gmra.mxu0 %vm71_vm1, %v38_v19 }
  0x27   :  { %2514 = vmatprep.mubr.msk.f32.mxu0 %vm71_vm1, %v39_v20 }
  0x2a   :  { %2515 = vmatmul.mubr.msk.f32.gmra.mxu0 %vm71_vm1, %v40_v21 }
  0x2b   :  { %2517 = vmatprep.mubr.msk.f32.mxu0 %vm71_vm1, %v41_v22 }
  0x2e   :  { %2518 = vmatmul.mubr.msk.f32.gmra.mxu0 %vm71_vm1, %v42_v23 }
  0x2f   :  { %2520 = vmatprep.mubr.msk.f32.mxu0 %vm71_vm1, %v43_v24 }
  0x32   :  { %2521 = vmatmul.mubr.msk.f32.gmra.mxu0 %vm71_vm1, %v44_v25 }
  0x33   :  { %2523 = vmatprep.mubr.msk.f32.mxu0 %vm71_vm1, %v45_v26 }
  0x36   :  { %2524 = vmatmul.mubr.msk.f32.gmra.mxu0 %vm71_vm1, %v46_v27 }
  0x37   :  { %2526 = vmatprep.mubr.msk.f32.mxu0 %vm71_vm1, %v47_v28 }
  0x3a   :  { %2527 = vmatmul.mubr.msk.f32.gmra.mxu0 %vm71_vm1, %v48_v29 }
  0x3b   :  { %2529 = vmatprep.mubr.msk.f32.mxu0 %vm71_vm1, %v49_v30 }
  0x3e   :  { %2530 = vmatmul.mubr.msk.f32.gmra.mxu0 %vm71_vm1, %v50_v31 }
  0x3f   :  { %2532 = vmatprep.mubr.msk.f32.mxu0 %vm71_vm1, %v51_v32 }
  0x42   :  { %2533 = vmatmul.mubr.msk.f32.gmra.mxu0 %vm71_vm1, %v52_v33 }
  0x43   :  { %2535 = vmatprep.mubr.msk.f32.mxu0 %vm71_vm1, %v53_v34 }
  0x46   :  { %2536 = vmatmul.mubr.msk.f32.gmra.mxu0 %vm71_vm1, %v54_v35 }
  0x47   :  { %2538 = vmatprep.mubr.msk.f32.mxu0 %vm71_vm1, %v55_v36 }
  0x4a   :  { %2539 = vmatmul.mubr.msk.f32.gmra.mxu0 %vm71_vm1, %v56_v37 }
  0x4b   :  { %2541 = vmatprep.mubr.msk.f32.mxu0 %vm71_vm1, %v57_v38 }
  0x4e   :  { %2542 = vmatmul.mubr.msk.f32.gmra.mxu0 %vm71_vm1, %v58_v39 }
  0x4f   :  { %2544 = vmatprep.mubr.msk.f32.mxu0 %vm71_vm1, %v59_v41 }
  0x52   :  { %2545 = vmatmul.mubr.msk.f32.gmra.mxu0 %vm71_vm1, %v60_v43 }
  0xca   :  { %v2492_v48 = vpop.f32.mrf.mxu0 }
  0xcb   :  { %v262_v49 = vadd.f32 %v2492_v48, %v3002_v47 }
  0xcc   :  { %v256_v50 = vpop.f32.mrf.mxu0 }
  0xcd   :  { %v257_v51 = vadd.f32 %v3002_v47, %v256_v50  ;;  %v446_v54 = vmax.f32 %v262_v49, 0.0 }
  0xce   :  { %v2495_v52 = vpop.f32.mrf.mxu0 }
  0xcf   :  { %v445_v53 = vmax.f32 %v257_v51, 0.0  ;;  %v272_v55 = vadd.f32 %v2495_v52, %v3002_v47 }
  0xd0   :  { %v266_v56 = vpop.f32.mrf.mxu0 }
  0xd1   :  { %v267_v57 = vadd.f32 %v3002_v47, %v266_v56  ;;  %2553 = vmatprep.mubr.msk.f32.mxu1 %vm71_vm1, %v445_v53  ;;  %v448_v60 = vmax.f32 %v272_v55, 0.0 }
  0xd2   :  { %v2498_v58 = vpop.f32.mrf.mxu0  ;;  %2554 = vmatmul.mubr.msk.f32.vlgmr.msra.gmra.mxu1 %vm71_vm1, %v446_v54 }
  0xd3   :  { %v447_v59 = vmax.f32 %v267_v57, 0.0  ;;  %v282_v61 = vadd.f32 %v2498_v58, %v3002_v47 }
  0xd4   :  { %v276_v62 = vpop.f32.mrf.mxu0 }
  0xd5   :  { %v277_v63 = vadd.f32 %v3002_v47, %v276_v62  ;;  %2556 = vmatprep.mubr.msk.f32.mxu1 %vm71_vm1, %v447_v59  ;;  %v450_v2 = vmax.f32 %v282_v61, 0.0 }
  0xd6   :  { %v2501_v0 = vpop.f32.mrf.mxu0  ;;  %2557 = vmatmul.mubr.msk.f32.gmra.mxu1 %vm71_vm1, %v448_v60 }
  0xd7   :  { %v449_v1 = vmax.f32 %v277_v63, 0.0  ;;  %v292_v3 = vadd.f32 %v2501_v0, %v3002_v47 }
  0xd8   :  { %v286_v4 = vpop.f32.mrf.mxu0 }
  0xd9   :  { %v287_v5 = vadd.f32 %v3002_v47, %v286_v4  ;;  %2559 = vmatprep.mubr.msk.f32.mxu1 %vm71_vm1, %v449_v1  ;;  %v452_v8 = vmax.f32 %v292_v3, 0.0 }
  0xda   :  { %v2504_v6 = vpop.f32.mrf.mxu0  ;;  %2560 = vmatmul.mubr.msk.f32.gmra.mxu1 %vm71_vm1, %v450_v2 }
  0xdb   :  { %v451_v7 = vmax.f32 %v287_v5, 0.0  ;;  %v302_v9 = vadd.f32 %v2504_v6, %v3002_v47 }
  0xdc   :  { %v296_v10 = vpop.f32.mrf.mxu0 }
  0xdd   :  { %v297_v11 = vadd.f32 %v3002_v47, %v296_v10  ;;  %2562 = vmatprep.mubr.msk.f32.mxu1 %vm71_vm1, %v451_v7  ;;  %v454_v14 = vmax.f32 %v302_v9, 0.0 }
  0xde   :  { %v2507_v12 = vpop.f32.mrf.mxu0  ;;  %2563 = vmatmul.mubr.msk.f32.gmra.mxu1 %vm71_vm1, %v452_v8 }
  0xdf   :  { %v453_v13 = vmax.f32 %v297_v11, 0.0  ;;  %v312_v15 = vadd.f32 %v2507_v12, %v3002_v47 }
  0xe0   :  { %v306_v16 = vpop.f32.mrf.mxu0 }
  0xe1   :  { %v307_v17 = vadd.f32 %v3002_v47, %v306_v16  ;;  %2565 = vmatprep.mubr.msk.f32.mxu1 %vm71_vm1, %v453_v13  ;;  %v456_v20 = vmax.f32 %v312_v15, 0.0 }
  0xe2   :  { %v2510_v18 = vpop.f32.mrf.mxu0  ;;  %2566 = vmatmul.mubr.msk.f32.gmra.mxu1 %vm71_vm1, %v454_v14 }
  0xe3   :  { %v455_v19 = vmax.f32 %v307_v17, 0.0  ;;  %v322_v21 = vadd.f32 %v2510_v18, %v3002_v47 }
  0xe4   :  { %v316_v22 = vpop.f32.mrf.mxu0 }
  0xe5   :  { %v317_v23 = vadd.f32 %v3002_v47, %v316_v22  ;;  %2568 = vmatprep.mubr.msk.f32.mxu1 %vm71_vm1, %v455_v19  ;;  %v458_v26 = vmax.f32 %v322_v21, 0.0 }
  0xe6   :  { %v2513_v24 = vpop.f32.mrf.mxu0  ;;  %2569 = vmatmul.mubr.msk.f32.gmra.mxu1 %vm71_vm1, %v456_v20 }
  0xe7   :  { %v457_v25 = vmax.f32 %v317_v23, 0.0  ;;  %v332_v27 = vadd.f32 %v2513_v24, %v3002_v47 }
  0xe8   :  { %v326_v28 = vpop.f32.mrf.mxu0 }
  0xe9   :  { %v327_v29 = vadd.f32 %v3002_v47, %v326_v28  ;;  %2571 = vmatprep.mubr.msk.f32.mxu1 %vm71_vm1, %v457_v25  ;;  %v460_v32 = vmax.f32 %v332_v27, 0.0 }
  0xea   :  { %v2516_v30 = vpop.f32.mrf.mxu0  ;;  %2572 = vmatmul.mubr.msk.f32.gmra.mxu1 %vm71_vm1, %v458_v26 }
  0xeb   :  { %v459_v31 = vmax.f32 %v327_v29, 0.0  ;;  %v342_v33 = vadd.f32 %v2516_v30, %v3002_v47 }
  0xec   :  { %v336_v34 = vpop.f32.mrf.mxu0 }
  0xed   :  { %v337_v35 = vadd.f32 %v3002_v47, %v336_v34  ;;  %2574 = vmatprep.mubr.msk.f32.mxu1 %vm71_vm1, %v459_v31  ;;  %v462_v38 = vmax.f32 %v342_v33, 0.0 }
  0xee   :  { %v2519_v36 = vpop.f32.mrf.mxu0  ;;  %2575 = vmatmul.mubr.msk.f32.gmra.mxu1 %vm71_vm1, %v460_v32 }
  0xef   :  { %v461_v37 = vmax.f32 %v337_v35, 0.0  ;;  %v352_v39 = vadd.f32 %v2519_v36, %v3002_v47  ;;  %v2151_v35 = vld [vmem:[%s3419_s1 + $0x30] sm:$0xff] }
  0xf0   :  { %v346_v40 = vpop.f32.mrf.mxu0  ;;  %2614 = vmatprep.subr.mxu0 %v2151_v35  ;;  %v2196_v36 = vld [vmem:[%s3419_s1 + $0x50] sm:$0xff] }
  0xf1   :  { %v347_v41 = vadd.f32 %v3002_v47, %v346_v40  ;;  %2577 = vmatprep.mubr.msk.f32.mxu1 %vm71_vm1, %v461_v37  ;;  %v464_v44 = vmax.f32 %v352_v39, 0.0  ;;  %2615 = vmatpush3.msra.mxu0 %v2151_v35  ;;  %v3094_v37 = vld [vmem:[%s3420_s2 + $0x1] ss:$0 sm:$0xff] }
  0xf2   :  { %v2522_v42 = vpop.f32.mrf.mxu0  ;;  %2578 = vmatmul.mubr.msk.f32.gmra.mxu1 %vm71_vm1, %v462_v38 }
  0xf3   :  { %v463_v43 = vmax.f32 %v347_v41, 0.0  ;;  %v362_v45 = vadd.f32 %v2522_v42, %v3002_v47 }
  0xf4   :  { %v356_v46 = vpop.f32.mrf.mxu0 }
  0xf5   :  { %v357_v48 = vadd.f32 %v3002_v47, %v356_v46  ;;  %2580 = vmatprep.mubr.msk.f32.mxu1 %vm71_vm1, %v463_v43  ;;  %v466_v51 = vmax.f32 %v362_v45, 0.0 }
  0xf6   :  { %v2525_v49 = vpop.f32.mrf.mxu0  ;;  %2581 = vmatmul.mubr.msk.f32.gmra.mxu1 %vm71_vm1, %v464_v44 }
  0xf7   :  { %v465_v50 = vmax.f32 %v357_v48, 0.0  ;;  %v372_v52 = vadd.f32 %v2525_v49, %v3002_v47 }
  0xf8   :  { %v366_v53 = vpop.f32.mrf.mxu0 }
  0xf9   :  { %v367_v54 = vadd.f32 %v3002_v47, %v366_v53  ;;  %2583 = vmatprep.mubr.msk.f32.mxu1 %vm71_vm1, %v465_v50  ;;  %v468_v57 = vmax.f32 %v372_v52, 0.0 }
  0xfa   :  { %v2528_v55 = vpop.f32.mrf.mxu0  ;;  %2584 = vmatmul.mubr.msk.f32.gmra.mxu1 %vm71_vm1, %v466_v51 }
  0xfb   :  { %v467_v56 = vmax.f32 %v367_v54, 0.0  ;;  %v382_v58 = vadd.f32 %v2528_v55, %v3002_v47 }
  0xfc   :  { %v376_v59 = vpop.f32.mrf.mxu0 }
  0xfd   :  { %v377_v60 = vadd.f32 %v3002_v47, %v376_v59  ;;  %2586 = vmatprep.mubr.msk.f32.mxu1 %vm71_vm1, %v467_v56  ;;  %v470_v63 = vmax.f32 %v382_v58, 0.0 }
  0xfe   :  { %v2531_v61 = vpop.f32.mrf.mxu0  ;;  %2587 = vmatmul.mubr.msk.f32.gmra.mxu1 %vm71_vm1, %v468_v57 }
  0xff   :  { %v469_v62 = vmax.f32 %v377_v60, 0.0  ;;  %v392_v0 = vadd.f32 %v2531_v61, %v3002_v47 }
 0x100   :  { %v386_v1 = vpop.f32.mrf.mxu0 }
 0x101   :  { %v387_v2 = vadd.f32 %v3002_v47, %v386_v1  ;;  %2589 = vmatprep.mubr.msk.f32.mxu1 %vm71_vm1, %v469_v62  ;;  %v472_v5 = vmax.f32 %v392_v0, 0.0 }
 0x102   :  { %v2534_v3 = vpop.f32.mrf.mxu0  ;;  %2590 = vmatmul.mubr.msk.f32.gmra.mxu1 %vm71_vm1, %v470_v63 }
 0x103   :  { %v471_v4 = vmax.f32 %v387_v2, 0.0  ;;  %v402_v6 = vadd.f32 %v2534_v3, %v3002_v47 }
 0x104   :  { %v396_v7 = vpop.f32.mrf.mxu0 }
 0x105   :  { %v397_v8 = vadd.f32 %v3002_v47, %v396_v7  ;;  %2592 = vmatprep.mubr.msk.f32.mxu1 %vm71_vm1, %v471_v4  ;;  %v474_v11 = vmax.f32 %v402_v6, 0.0 }
 0x106   :  { %v2537_v9 = vpop.f32.mrf.mxu0  ;;  %2593 = vmatmul.mubr.msk.f32.gmra.mxu1 %vm71_vm1, %v472_v5 }
 0x107   :  { %v473_v10 = vmax.f32 %v397_v8, 0.0  ;;  %v412_v12 = vadd.f32 %v2537_v9, %v3002_v47 }
 0x108   :  { %v406_v13 = vpop.f32.mrf.mxu0 }
 0x109   :  { %v407_v14 = vadd.f32 %v3002_v47, %v406_v13  ;;  %2595 = vmatprep.mubr.msk.f32.mxu1 %vm71_vm1, %v473_v10  ;;  %v476_v18 = vmax.f32 %v412_v12, 0.0 }
 0x10a   :  { %v2540_v15 = vpop.f32.mrf.mxu0  ;;  %2596 = vmatmul.mubr.msk.f32.gmra.mxu1 %vm71_vm1, %v474_v11 }
 0x10b   :  { %v475_v16 = vmax.f32 %v407_v14, 0.0  ;;  %v422_v17 = vadd.f32 %v2540_v15, %v3002_v47 }
 0x10c   :  { %v416_v19 = vpop.f32.mrf.mxu0 }
 0x10d   :  { %v417_v20 = vadd.f32 %v3002_v47, %v416_v19  ;;  %2598 = vmatprep.mubr.msk.f32.mxu1 %vm71_vm1, %v475_v16  ;;  %v478_v21 = vmax.f32 %v422_v17, 0.0 }
 0x10e   :  { %v2543_v22 = vpop.f32.mrf.mxu0  ;;  %2599 = vmatmul.mubr.msk.f32.gmra.mxu1 %vm71_vm1, %v476_v18 }
 0x10f   :  { %v477_v23 = vmax.f32 %v417_v20, 0.0  ;;  %v432_v24 = vadd.f32 %v2543_v22, %v3002_v47 }
 0x110   :  { %v426_v25 = vpop.f32.mrf.mxu0 }
 0x111   :  { %v427_v26 = vadd.f32 %v3002_v47, %v426_v25  ;;  %2601 = vmatprep.mubr.msk.f32.mxu1 %vm71_vm1, %v477_v23  ;;  %v480_v27 = vmax.f32 %v432_v24, 0.0 }
 0x112   :  { %v2546_v28 = vpop.f32.mrf.mxu0  ;;  %2602 = vmatmul.mubr.msk.f32.gmra.mxu1 %vm71_vm1, %v478_v21 }
 0x113   :  { %v479_v29 = vmax.f32 %v427_v26, 0.0  ;;  %v442_v30 = vadd.f32 %v2546_v28, %v3002_v47 }
 0x114   :  { %v436_v31 = vpop.f32.mrf.mxu0 }
 0x115   :  { %v437_v32 = vadd.f32 %v3002_v47, %v436_v31  ;;  %2604 = vmatprep.mubr.msk.f32.mxu1 %vm71_vm1, %v479_v29  ;;  %v482_v33 = vmax.f32 %v442_v30, 0.0  ;;  %v2197_v47 = vld [vmem:[%s3419_s1 + $0x58] sm:$0xf] }
 0x116   :  { %2605 = vmatmul.mubr.msk.f32.gmra.mxu1 %vm71_vm1, %v480_v27  ;;  %2673 = vmatprep.subr.msk.mxu1 %vm186_vm0, %v2197_v47 }
 0x117   :  { %v481_v34 = vmax.f32 %v437_v32, 0.0  ;;  %2674 = vmatpush3.msk.msra.mxu1 %vm186_vm0, %v2197_v47 }
 0x118   :  { %2675 = vmatprep.subr.mxu1 %v2196_v36 }
 0x119   :  { %2607 = vmatprep.mubr.msk.f32.mxu1 %vm71_vm1, %v481_v34  ;;  %2676 = vmatpush3.msra.mxu1 %v2196_v36 }
 0x11a   :  { %2608 = vmatmul.mubr.msk.f32.gmra.mxu1 %vm71_vm1, %v482_v33 }
 0x192   :  { %v2555_v38 = vpop.f32.mrf.mxu1 }
 0x193   :  { %v684_v39 = vadd.f32 %v2555_v38, %v3094_v37 }
 0x194   :  { %v678_v40 = vpop.f32.mrf.mxu1 }
 0x195   :  { %v679_v41 = vadd.f32 %v3094_v37, %v678_v40  ;;  %v868_v44 = vmax.f32 %v684_v39, 0.0 }
 0x196   :  { %v2558_v42 = vpop.f32.mrf.mxu1 }
 0x197   :  { %v867_v43 = vmax.f32 %v679_v41, 0.0  ;;  %v694_v45 = vadd.f32 %v2558_v42, %v3094_v37 }
 0x198   :  { %v688_v46 = vpop.f32.mrf.mxu1 }
 0x199   :  { %v689_v48 = vadd.f32 %v3094_v37, %v688_v46  ;;  %2616 = vmatprep.mubr.msk.f32.mxu0 %vm71_vm1, %v867_v43  ;;  %v870_v51 = vmax.f32 %v694_v45, 0.0 }
 0x19a   :  { %v2561_v49 = vpop.f32.mrf.mxu1  ;;  %2617 = vmatmul.mubr.msk.f32.vlgmr.msra.gmra.mxu0 %vm71_vm1, %v868_v44 }
 0x19b   :  { %v869_v50 = vmax.f32 %v689_v48, 0.0  ;;  %v704_v52 = vadd.f32 %v2561_v49, %v3094_v37 }
 0x19c   :  { %v698_v53 = vpop.f32.mrf.mxu1 }
 0x19d   :  { %v699_v54 = vadd.f32 %v3094_v37, %v698_v53  ;;  %2619 = vmatprep.mubr.msk.f32.mxu0 %vm71_vm1, %v869_v50  ;;  %v872_v57 = vmax.f32 %v704_v52, 0.0 }
 0x19e   :  { %v2564_v55 = vpop.f32.mrf.mxu1  ;;  %2620 = vmatmul.mubr.msk.f32.gmra.mxu0 %vm71_vm1, %v870_v51 }
 0x19f   :  { %v871_v56 = vmax.f32 %v699_v54, 0.0  ;;  %v714_v58 = vadd.f32 %v2564_v55, %v3094_v37 }
 0x1a0   :  { %v708_v59 = vpop.f32.mrf.mxu1 }
 0x1a1   :  { %v709_v60 = vadd.f32 %v3094_v37, %v708_v59  ;;  %2622 = vmatprep.mubr.msk.f32.mxu0 %vm71_vm1, %v871_v56  ;;  %v874_v63 = vmax.f32 %v714_v58, 0.0 }
 0x1a2   :  { %v2567_v61 = vpop.f32.mrf.mxu1  ;;  %2623 = vmatmul.mubr.msk.f32.gmra.mxu0 %vm71_vm1, %v872_v57 }
 0x1a3   :  { %v873_v62 = vmax.f32 %v709_v60, 0.0  ;;  %v724_v0 = vadd.f32 %v2567_v61, %v3094_v37 }
 0x1a4   :  { %v718_v1 = vpop.f32.mrf.mxu1 }
 0x1a5   :  { %v719_v2 = vadd.f32 %v3094_v37, %v718_v1  ;;  %2625 = vmatprep.mubr.msk.f32.mxu0 %vm71_vm1, %v873_v62  ;;  %v876_v5 = vmax.f32 %v724_v0, 0.0 }
 0x1a6   :  { %v2570_v3 = vpop.f32.mrf.mxu1  ;;  %2626 = vmatmul.mubr.msk.f32.gmra.mxu0 %vm71_vm1, %v874_v63 }
 0x1a7   :  { %v875_v4 = vmax.f32 %v719_v2, 0.0  ;;  %v734_v6 = vadd.f32 %v2570_v3, %v3094_v37 }
 0x1a8   :  { %v728_v7 = vpop.f32.mrf.mxu1 }
 0x1a9   :  { %v729_v8 = vadd.f32 %v3094_v37, %v728_v7  ;;  %2628 = vmatprep.mubr.msk.f32.mxu0 %vm71_vm1, %v875_v4  ;;  %v878_v11 = vmax.f32 %v734_v6, 0.0 }
 0x1aa   :  { %v2573_v9 = vpop.f32.mrf.mxu1  ;;  %2629 = vmatmul.mubr.msk.f32.gmra.mxu0 %vm71_vm1, %v876_v5 }
 0x1ab   :  { %v877_v10 = vmax.f32 %v729_v8, 0.0  ;;  %v744_v12 = vadd.f32 %v2573_v9, %v3094_v37 }
 0x1ac   :  { %v738_v13 = vpop.f32.mrf.mxu1 }
 0x1ad   :  { %v739_v14 = vadd.f32 %v3094_v37, %v738_v13  ;;  %2631 = vmatprep.mubr.msk.f32.mxu0 %vm71_vm1, %v877_v10  ;;  %v880_v17 = vmax.f32 %v744_v12, 0.0 }
 0x1ae   :  { %v2576_v15 = vpop.f32.mrf.mxu1  ;;  %2632 = vmatmul.mubr.msk.f32.gmra.mxu0 %vm71_vm1, %v878_v11 }
 0x1af   :  { %v879_v16 = vmax.f32 %v739_v14, 0.0  ;;  %v754_v18 = vadd.f32 %v2576_v15, %v3094_v37 }
 0x1b0   :  { %v748_v19 = vpop.f32.mrf.mxu1 }
 0x1b1   :  { %v749_v20 = vadd.f32 %v3094_v37, %v748_v19  ;;  %2634 = vmatprep.mubr.msk.f32.mxu0 %vm71_vm1, %v879_v16  ;;  %v882_v23 = vmax.f32 %v754_v18, 0.0 }
 0x1b2   :  { %v2579_v21 = vpop.f32.mrf.mxu1  ;;  %2635 = vmatmul.mubr.msk.f32.gmra.mxu0 %vm71_vm1, %v880_v17 }
 0x1b3   :  { %v881_v22 = vmax.f32 %v749_v20, 0.0  ;;  %v764_v24 = vadd.f32 %v2579_v21, %v3094_v37 }
 0x1b4   :  { %v758_v25 = vpop.f32.mrf.mxu1 }
 0x1b5   :  { %v759_v26 = vadd.f32 %v3094_v37, %v758_v25  ;;  %2637 = vmatprep.mubr.msk.f32.mxu0 %vm71_vm1, %v881_v22  ;;  %v884_v29 = vmax.f32 %v764_v24, 0.0 }
 0x1b6   :  { %v2582_v27 = vpop.f32.mrf.mxu1  ;;  %2638 = vmatmul.mubr.msk.f32.gmra.mxu0 %vm71_vm1, %v882_v23 }
 0x1b7   :  { %v883_v28 = vmax.f32 %v759_v26, 0.0  ;;  %v774_v30 = vadd.f32 %v2582_v27, %v3094_v37  ;;  %v2195_v26 = vld [vmem:[%s3419_s1 + $0x48] sm:$0xff] }
 0x1b8   :  { %v768_v31 = vpop.f32.mrf.mxu1  ;;  %2677 = vmatprep.subr.mxu1 %v2195_v26 }
 0x1b9   :  { %v769_v32 = vadd.f32 %v3094_v37, %v768_v31  ;;  %2640 = vmatprep.mubr.msk.f32.mxu0 %vm71_vm1, %v883_v28  ;;  %v886_v35 = vmax.f32 %v774_v30, 0.0  ;;  %2678 = vmatpush3.msra.mxu1 %v2195_v26 }
 0x1ba   :  { %v2585_v33 = vpop.f32.mrf.mxu1  ;;  %2641 = vmatmul.mubr.msk.f32.gmra.mxu0 %vm71_vm1, %v884_v29 }
 0x1bb   :  { %v885_v34 = vmax.f32 %v769_v32, 0.0  ;;  %v784_v47 = vadd.f32 %v2585_v33, %v3094_v37 }
 0x1bc   :  { %v778_v36 = vpop.f32.mrf.mxu1 }
 0x1bd   :  { %v779_v38 = vadd.f32 %v3094_v37, %v778_v36  ;;  %2643 = vmatprep.mubr.msk.f32.mxu0 %vm71_vm1, %v885_v34  ;;  %v888_v41 = vmax.f32 %v784_v47, 0.0 }
 0x1be   :  { %v2588_v39 = vpop.f32.mrf.mxu1  ;;  %2644 = vmatmul.mubr.msk.f32.gmra.mxu0 %vm71_vm1, %v886_v35 }
 0x1bf   :  { %v887_v40 = vmax.f32 %v779_v38, 0.0  ;;  %v794_v42 = vadd.f32 %v2588_v39, %v3094_v37 }
 0x1c0   :  { %v788_v43 = vpop.f32.mrf.mxu1 }
 0x1c1   :  { %v789_v44 = vadd.f32 %v3094_v37, %v788_v43  ;;  %2646 = vmatprep.mubr.msk.f32.mxu0 %vm71_vm1, %v887_v40  ;;  %v890_v48 = vmax.f32 %v794_v42, 0.0 }
 0x1c2   :  { %v2591_v45 = vpop.f32.mrf.mxu1  ;;  %2647 = vmatmul.mubr.msk.f32.gmra.mxu0 %vm71_vm1, %v888_v41 }
 0x1c3   :  { %v889_v46 = vmax.f32 %v789_v44, 0.0  ;;  %v804_v49 = vadd.f32 %v2591_v45, %v3094_v37 }
 0x1c4   :  { %v798_v50 = vpop.f32.mrf.mxu1 }
 0x1c5   :  { %v799_v51 = vadd.f32 %v3094_v37, %v798_v50  ;;  %2649 = vmatprep.mubr.msk.f32.mxu0 %vm71_vm1, %v889_v46  ;;  %v892_v54 = vmax.f32 %v804_v49, 0.0 }
 0x1c6   :  { %v2594_v52 = vpop.f32.mrf.mxu1  ;;  %2650 = vmatmul.mubr.msk.f32.gmra.mxu0 %vm71_vm1, %v890_v48 }
 0x1c7   :  { %v891_v53 = vmax.f32 %v799_v51, 0.0  ;;  %v814_v55 = vadd.f32 %v2594_v52, %v3094_v37 }
 0x1c8   :  { %v808_v56 = vpop.f32.mrf.mxu1 }
 0x1c9   :  { %v809_v57 = vadd.f32 %v3094_v37, %v808_v56  ;;  %2652 = vmatprep.mubr.msk.f32.mxu0 %vm71_vm1, %v891_v53  ;;  %v894_v60 = vmax.f32 %v814_v55, 0.0 }
 0x1ca   :  { %v2597_v58 = vpop.f32.mrf.mxu1  ;;  %2653 = vmatmul.mubr.msk.f32.gmra.mxu0 %vm71_vm1, %v892_v54 }
 0x1cb   :  { %v893_v59 = vmax.f32 %v809_v57, 0.0  ;;  %v824_v61 = vadd.f32 %v2597_v58, %v3094_v37 }
 0x1cc   :  { %v818_v62 = vpop.f32.mrf.mxu1 }
 0x1cd   :  { %v819_v63 = vadd.f32 %v3094_v37, %v818_v62  ;;  %2655 = vmatprep.mubr.msk.f32.mxu0 %vm71_vm1, %v893_v59  ;;  %v896_v2 = vmax.f32 %v824_v61, 0.0 }
 0x1ce   :  { %v2600_v0 = vpop.f32.mrf.mxu1  ;;  %2656 = vmatmul.mubr.msk.f32.gmra.mxu0 %vm71_vm1, %v894_v60 }
 0x1cf   :  { %v895_v1 = vmax.f32 %v819_v63, 0.0  ;;  %v834_v3 = vadd.f32 %v2600_v0, %v3094_v37 }
 0x1d0   :  { %v828_v4 = vpop.f32.mrf.mxu1 }
 0x1d1   :  { %v829_v5 = vadd.f32 %v3094_v37, %v828_v4  ;;  %2658 = vmatprep.mubr.msk.f32.mxu0 %vm71_vm1, %v895_v1  ;;  %v898_v9 = vmax.f32 %v834_v3, 0.0 }
 0x1d2   :  { %v2603_v6 = vpop.f32.mrf.mxu1  ;;  %2659 = vmatmul.mubr.msk.f32.gmra.mxu0 %vm71_vm1, %v896_v2 }
 0x1d3   :  { %v897_v7 = vmax.f32 %v829_v5, 0.0  ;;  %v844_v8 = vadd.f32 %v2603_v6, %v3094_v37 }
 0x1d4   :  { %v838_v10 = vpop.f32.mrf.mxu1 }
 0x1d5   :  { %v839_v11 = vadd.f32 %v3094_v37, %v838_v10  ;;  %2661 = vmatprep.mubr.msk.f32.mxu0 %vm71_vm1, %v897_v7  ;;  %v900_v12 = vmax.f32 %v844_v8, 0.0 }
 0x1d6   :  { %v2606_v13 = vpop.f32.mrf.mxu1  ;;  %2662 = vmatmul.mubr.msk.f32.gmra.mxu0 %vm71_vm1, %v898_v9 }
 0x1d7   :  { %v899_v14 = vmax.f32 %v839_v11, 0.0  ;;  %v854_v15 = vadd.f32 %v2606_v13, %v3094_v37 }
 0x1d8   :  { %v848_v16 = vpop.f32.mrf.mxu1 }
 0x1d9   :  { %v849_v17 = vadd.f32 %v3094_v37, %v848_v16  ;;  %2664 = vmatprep.mubr.msk.f32.mxu0 %vm71_vm1, %v899_v14  ;;  %v902_v18 = vmax.f32 %v854_v15, 0.0 }
 0x1da   :  { %v2609_v19 = vpop.f32.mrf.mxu1  ;;  %2665 = vmatmul.mubr.msk.f32.gmra.mxu0 %vm71_vm1, %v900_v12 }
 0x1db   :  { %v901_v20 = vmax.f32 %v849_v17, 0.0  ;;  %v864_v21 = vadd.f32 %v2609_v19, %v3094_v37 }
 0x1dc   :  { %v858_v22 = vpop.f32.mrf.mxu1 }
 0x1dd   :  { %v859_v23 = vadd.f32 %v3094_v37, %v858_v22  ;;  %2667 = vmatprep.mubr.msk.f32.mxu0 %vm71_vm1, %v901_v20  ;;  %v904_v24 = vmax.f32 %v864_v21, 0.0  ;;  %v3178_v37 = vld [vmem:[%s3420_s2 + $0x2] ss:$0 sm:$0xff] }
 0x1de   :  { %2668 = vmatmul.mubr.msk.f32.gmra.mxu0 %vm71_vm1, %v902_v18 }
 0x1df   :  { %v903_v25 = vmax.f32 %v859_v23, 0.0 }
 0x1e1   :  { %2670 = vmatprep.mubr.msk.f32.mxu0 %vm71_vm1, %v903_v25 }
 0x1e2   :  { %2671 = vmatmul.mubr.msk.f32.gmra.mxu0 %vm71_vm1, %v904_v24 }
 0x25a   :  { %v2618_v27 = vpop.f32.mrf.mxu0 }
 0x25b   :  { %v1106_v28 = vadd.f32 %v2618_v27, %v3178_v37 }
 0x25c   :  { %v1100_v29 = vpop.f32.mrf.mxu0 }
 0x25d   :  { %v1101_v30 = vadd.f32 %v3178_v37, %v1100_v29  ;;  %v1290_v33 = vmax.f32 %v1106_v28, 0.0 }
 0x25e   :  { %v2621_v31 = vpop.f32.mrf.mxu0 }
 0x25f   :  { %v1289_v32 = vmax.f32 %v1101_v30, 0.0  ;;  %v1116_v34 = vadd.f32 %v2621_v31, %v3178_v37 }
 0x260   :  { %v1110_v35 = vpop.f32.mrf.mxu0 }
 0x261   :  { %v1111_v47 = vadd.f32 %v3178_v37, %v1110_v35  ;;  %2679 = vmatprep.mubr.msk.f32.mxu1 %vm71_vm1, %v1289_v32  ;;  %v1292_v39 = vmax.f32 %v1116_v34, 0.0 }
 0x262   :  { %v2624_v36 = vpop.f32.mrf.mxu0  ;;  %2680 = vmatmul.mubr.msk.f32.vlgmr.msra.gmra.mxu1 %vm71_vm1, %v1290_v33 }
 0x263   :  { %v1291_v38 = vmax.f32 %v1111_v47, 0.0  ;;  %v1126_v40 = vadd.f32 %v2624_v36, %v3178_v37 }
 0x264   :  { %v1120_v41 = vpop.f32.mrf.mxu0 }
 0x265   :  { %v1121_v42 = vadd.f32 %v3178_v37, %v1120_v41  ;;  %2682 = vmatprep.mubr.msk.f32.mxu1 %vm71_vm1, %v1291_v38  ;;  %v1294_v45 = vmax.f32 %v1126_v40, 0.0 }
 0x266   :  { %v2627_v43 = vpop.f32.mrf.mxu0  ;;  %2683 = vmatmul.mubr.msk.f32.gmra.mxu1 %vm71_vm1, %v1292_v39 }
 0x267   :  { %v1293_v44 = vmax.f32 %v1121_v42, 0.0  ;;  %v1136_v46 = vadd.f32 %v2627_v43, %v3178_v37 }
 0x268   :  { %v1130_v48 = vpop.f32.mrf.mxu0 }
 0x269   :  { %v1131_v49 = vadd.f32 %v3178_v37, %v1130_v48  ;;  %2685 = vmatprep.mubr.msk.f32.mxu1 %vm71_vm1, %v1293_v44  ;;  %v1296_v52 = vmax.f32 %v1136_v46, 0.0 }
 0x26a   :  { %v2630_v50 = vpop.f32.mrf.mxu0  ;;  %2686 = vmatmul.mubr.msk.f32.gmra.mxu1 %vm71_vm1, %v1294_v45 }
 0x26b   :  { %v1295_v51 = vmax.f32 %v1131_v49, 0.0  ;;  %v1146_v53 = vadd.f32 %v2630_v50, %v3178_v37 }
 0x26c   :  { %v1140_v54 = vpop.f32.mrf.mxu0 }
 0x26d   :  { %v1141_v55 = vadd.f32 %v3178_v37, %v1140_v54  ;;  %2688 = vmatprep.mubr.msk.f32.mxu1 %vm71_vm1, %v1295_v51  ;;  %v1298_v58 = vmax.f32 %v1146_v53, 0.0 }
 0x26e   :  { %v2633_v56 = vpop.f32.mrf.mxu0  ;;  %2689 = vmatmul.mubr.msk.f32.gmra.mxu1 %vm71_vm1, %v1296_v52 }
 0x26f   :  { %v1297_v57 = vmax.f32 %v1141_v55, 0.0  ;;  %v1156_v59 = vadd.f32 %v2633_v56, %v3178_v37 }
 0x270   :  { %v1150_v60 = vpop.f32.mrf.mxu0 }
 0x271   :  { %v1151_v61 = vadd.f32 %v3178_v37, %v1150_v60  ;;  %2691 = vmatprep.mubr.msk.f32.mxu1 %vm71_vm1, %v1297_v57  ;;  %v1300_v0 = vmax.f32 %v1156_v59, 0.0 }
 0x272   :  { %v2636_v62 = vpop.f32.mrf.mxu0  ;;  %2692 = vmatmul.mubr.msk.f32.gmra.mxu1 %vm71_vm1, %v1298_v58 }
 0x273   :  { %v1299_v63 = vmax.f32 %v1151_v61, 0.0  ;;  %v1166_v1 = vadd.f32 %v2636_v62, %v3178_v37 }
 0x274   :  { %v1160_v2 = vpop.f32.mrf.mxu0 }
 0x275   :  { %v1161_v3 = vadd.f32 %v3178_v37, %v1160_v2  ;;  %2694 = vmatprep.mubr.msk.f32.mxu1 %vm71_vm1, %v1299_v63  ;;  %v1302_v6 = vmax.f32 %v1166_v1, 0.0 }
 0x276   :  { %v2639_v4 = vpop.f32.mrf.mxu0  ;;  %2695 = vmatmul.mubr.msk.f32.gmra.mxu1 %vm71_vm1, %v1300_v0 }
 0x277   :  { %v1301_v5 = vmax.f32 %v1161_v3, 0.0  ;;  %v1176_v7 = vadd.f32 %v2639_v4, %v3178_v37 }
 0x278   :  { %v1170_v8 = vpop.f32.mrf.mxu0 }
 0x279   :  { %v1171_v9 = vadd.f32 %v3178_v37, %v1170_v8  ;;  %2697 = vmatprep.mubr.msk.f32.mxu1 %vm71_vm1, %v1301_v5  ;;  %v1304_v12 = vmax.f32 %v1176_v7, 0.0 }
 0x27a   :  { %v2642_v10 = vpop.f32.mrf.mxu0  ;;  %2698 = vmatmul.mubr.msk.f32.gmra.mxu1 %vm71_vm1, %v1302_v6 }
 0x27b   :  { %v1303_v11 = vmax.f32 %v1171_v9, 0.0  ;;  %v1186_v13 = vadd.f32 %v2642_v10, %v3178_v37 }
 0x27c   :  { %v1180_v14 = vpop.f32.mrf.mxu0 }
 0x27d   :  { %v1181_v15 = vadd.f32 %v3178_v37, %v1180_v14  ;;  %2700 = vmatprep.mubr.msk.f32.mxu1 %vm71_vm1, %v1303_v11  ;;  %v1306_v18 = vmax.f32 %v1186_v13, 0.0 }
 0x27e   :  { %v2645_v16 = vpop.f32.mrf.mxu0  ;;  %2701 = vmatmul.mubr.msk.f32.gmra.mxu1 %vm71_vm1, %v1304_v12 }
 0x27f   :  { %v1305_v17 = vmax.f32 %v1181_v15, 0.0  ;;  %v1196_v19 = vadd.f32 %v2645_v16, %v3178_v37  ;;  %v2779_v15 = vmov 0.0   ;;  %v3260_v16 = vld [vmem:[%s3421_s3] sm:$0x1] }
 0x280   :  { %v1190_v20 = vpop.f32.mrf.mxu0  ;;  %2736 = vmatprep.subr.mxu1 %v2779_v15  ;;  %2475 = vmatprep.mubr.msk.f32.mxu0 %vm71_vm1, %v3260_v16 }
 0x281   :  { %v1191_v21 = vadd.f32 %v3178_v37, %v1190_v20  ;;  %2703 = vmatprep.mubr.msk.f32.mxu1 %vm71_vm1, %v1305_v17  ;;  %v1308_v24 = vmax.f32 %v1196_v19, 0.0  ;;  %v1750_v17 = vld [vmem:[#allocation2] sm:$0x1]  ;;  %v2781_v19 = vmov 0  }
 0x282   :  { %v2648_v22 = vpop.f32.mrf.mxu0  ;;  %2704 = vmatmul.mubr.msk.f32.gmra.mxu1 %vm71_vm1, %v1306_v18  ;;  %2756 = vset.pattern.permute.xlu0 %v2781_v19 }
 0x283   :  { %v1307_v23 = vmax.f32 %v1191_v21, 0.0  ;;  %v1206_v25 = vadd.f32 %v2648_v22, %v3178_v37  ;;  %1753 = vperm.xlu0 %2756, %v1750_v17  }
 0x284   :  { %v1200_v26 = vpop.f32.mrf.mxu0 }
 0x285   :  { %v1201_v27 = vadd.f32 %v3178_v37, %v1200_v26  ;;  %2706 = vmatprep.mubr.msk.f32.mxu1 %vm71_vm1, %v1307_v23  ;;  %v1310_v30 = vmax.f32 %v1206_v25, 0.0 }
 0x286   :  { %v2651_v28 = vpop.f32.mrf.mxu0  ;;  %2707 = vmatmul.mubr.msk.f32.gmra.mxu1 %vm71_vm1, %v1308_v24 }
 0x287   :  { %v1309_v29 = vmax.f32 %v1201_v27, 0.0  ;;  %v1216_v31 = vadd.f32 %v2651_v28, %v3178_v37 }
 0x288   :  { %v1210_v32 = vpop.f32.mrf.mxu0 }
 0x289   :  { %v1211_v33 = vadd.f32 %v3178_v37, %v1210_v32  ;;  %2709 = vmatprep.mubr.msk.f32.mxu1 %vm71_vm1, %v1309_v29  ;;  %v1312_v47 = vmax.f32 %v1216_v31, 0.0 }
 0x28a   :  { %v2654_v34 = vpop.f32.mrf.mxu0  ;;  %2710 = vmatmul.mubr.msk.f32.gmra.mxu1 %vm71_vm1, %v1310_v30 }
 0x28b   :  { %v1311_v35 = vmax.f32 %v1211_v33, 0.0  ;;  %v1226_v36 = vadd.f32 %v2654_v34, %v3178_v37 }
 0x28c   :  { %v1220_v38 = vpop.f32.mrf.mxu0 }
 0x28d   :  { %v1221_v39 = vadd.f32 %v3178_v37, %v1220_v38  ;;  %2712 = vmatprep.mubr.msk.f32.mxu1 %vm71_vm1, %v1311_v35  ;;  %v1314_v42 = vmax.f32 %v1226_v36, 0.0 }
 0x28e   :  { %v2657_v40 = vpop.f32.mrf.mxu0  ;;  %2713 = vmatmul.mubr.msk.f32.gmra.mxu1 %vm71_vm1, %v1312_v47 }
 0x28f   :  { %v1313_v41 = vmax.f32 %v1221_v39, 0.0  ;;  %v1236_v43 = vadd.f32 %v2657_v40, %v3178_v37 }
 0x290   :  { %v1230_v44 = vpop.f32.mrf.mxu0 }
 0x291   :  { %v1231_v45 = vadd.f32 %v3178_v37, %v1230_v44  ;;  %2715 = vmatprep.mubr.msk.f32.mxu1 %vm71_vm1, %v1313_v41  ;;  %v1316_v49 = vmax.f32 %v1236_v43, 0.0 }
 0x292   :  { %v2660_v46 = vpop.f32.mrf.mxu0  ;;  %2716 = vmatmul.mubr.msk.f32.gmra.mxu1 %vm71_vm1, %v1314_v42 }
 0x293   :  { %v1315_v48 = vmax.f32 %v1231_v45, 0.0  ;;  %v1246_v50 = vadd.f32 %v2660_v46, %v3178_v37 }
 0x294   :  { %v1240_v51 = vpop.f32.mrf.mxu0 }
 0x295   :  { %v1241_v52 = vadd.f32 %v3178_v37, %v1240_v51  ;;  %2718 = vmatprep.mubr.msk.f32.mxu1 %vm71_vm1, %v1315_v48  ;;  %v1318_v55 = vmax.f32 %v1246_v50, 0.0 }
 0x296   :  { %v2663_v53 = vpop.f32.mrf.mxu0  ;;  %2719 = vmatmul.mubr.msk.f32.gmra.mxu1 %vm71_vm1, %v1316_v49  ;;  %v3308_v49 = vld [vmem:[%s3420_s2 + $0x3] ss:$0 sm:$0xff]  ;;  %s2783_s2 = smov [#allocation3]  }
 0x297   :  { %v1317_v54 = vmax.f32 %v1241_v52, 0.0  ;;  %v1256_v56 = vadd.f32 %v2663_v53, %v3178_v37  ;;  %s2059_s23 = sshll.u32 %s2783_s2, 4  ;;  %s2060_s23 = int_to_ptr.vmem [resolvable:$true] %s2059_s23 }
 0x298   :  { %v1250_v57 = vpop.f32.mrf.mxu0  ;;  %s2757_s24 = scalar_lea.vmem %s2060_s23, 48  ;;  %s2761_s25 = scalar_lea.vmem %s2060_s23, 64 }
 0x299   :  { %v1251_v58 = vadd.f32 %v3178_v37, %v1250_v57  ;;  %2721 = vmatprep.mubr.msk.f32.mxu1 %vm71_vm1, %v1317_v54  ;;  %v1320_v62 = vmax.f32 %v1256_v56, 0.0  ;;  %p2758_p0 = scmp.ne.s32.totalorder %s2060_s23, %s2757_s24  ;;  %p2762_p1 = scmp.lt.s32.totalorder %s2060_s23, %s2060_s23 }
 0x29a   :  { %v2666_v59 = vpop.f32.mrf.mxu0  ;;  %2722 = vmatmul.mubr.msk.f32.gmra.mxu1 %vm71_vm1, %v1318_v55  ;;  %p2763_p2 = scmp.lt.s32.totalorder %s2761_s25, %s2757_s24 }
 0x29b   :  { %v1319_v60 = vmax.f32 %v1251_v58, 0.0  ;;  %v1266_v61 = vadd.f32 %v2666_v59, %v3178_v37 }
 0x29c   :  { %v1260_v63 = vpop.f32.mrf.mxu0  ;;  %p2764_p3 = por %p2763_p2, %p2762_p1 }
 0x29d   :  { %v1261_v0 = vadd.f32 %v3178_v37, %v1260_v63  ;;  %2724 = vmatprep.mubr.msk.f32.mxu1 %vm71_vm1, %v1319_v60  ;;  %v1322_v1 = vmax.f32 %v1266_v61, 0.0 }
 0x29e   :  { %v2669_v2 = vpop.f32.mrf.mxu0  ;;  %2725 = vmatmul.mubr.msk.f32.gmra.mxu1 %vm71_vm1, %v1320_v62  ;;  %p2765_p4 = pnand %p2764_p3, %p2758_p0 }
 0x29f   :  { %v1321_v3 = vmax.f32 %v1261_v0, 0.0  ;;  %v1276_v4 = vadd.f32 %v2669_v2, %v3178_v37 }
 0x2a0   :  { %v1270_v5 = vpop.f32.mrf.mxu0 }
 0x2a1   :  { %v1271_v6 = vadd.f32 %v3178_v37, %v1270_v5  ;;  %2727 = vmatprep.mubr.msk.f32.mxu1 %vm71_vm1, %v1321_v3  ;;  %v1324_v7 = vmax.f32 %v1276_v4, 0.0 }
 0x2a2   :  { %v2672_v8 = vpop.f32.mrf.mxu0  ;;  %2728 = vmatmul.mubr.msk.f32.gmra.mxu1 %vm71_vm1, %v1322_v1 }
 0x2a3   :  { %v1323_v9 = vmax.f32 %v1271_v6, 0.0  ;;  %v1286_v10 = vadd.f32 %v2672_v8, %v3178_v37 }
 0x2a4   :  { %v1280_v11 = vpop.f32.mrf.mxu0 }
 0x2a5   :  { %v1281_v12 = vadd.f32 %v3178_v37, %v1280_v11  ;;  %2730 = vmatprep.mubr.msk.f32.mxu1 %vm71_vm1, %v1323_v9  ;;  %v1326_v13 = vmax.f32 %v1286_v10, 0.0 }
 0x2a6   :  { %2731 = vmatmul.mubr.msk.f32.gmra.mxu1 %vm71_vm1, %v1324_v7 }
 0x2a7   :  { %v1325_v14 = vmax.f32 %v1281_v12, 0.0 }
 0x2a9   :  { %2733 = vmatprep.mubr.msk.f32.mxu1 %vm71_vm1, %v1325_v14 }
 0x2aa   :  { %2734 = vmatmul.mubr.msk.f32.gmra.mxu1 %vm71_vm1, %v1326_v13 }
 0x2ab   :  { %2748 = vmatprep.mubr.msk.f32.mxu1 %vm2780_vm2, %v2779_v15 }
 0x322   :  { %v3264_v37 = vpop.f32.mrf.mxu1 }
 0x324   :  { %v3266_v18 = vpop.f32.mrf.mxu1 }
 0x326   :  { %v3269_v20 = vpop.f32.mrf.mxu1 }
 0x328   :  { %v3271_v21 = vpop.f32.mrf.mxu1 }
 0x32a   :  { %v3273_v22 = vpop.f32.mrf.mxu1 }
 0x32c   :  { %v3275_v23 = vpop.f32.mrf.mxu1 }
 0x32e   :  { %v3277_v24 = vpop.f32.mrf.mxu1 }
 0x330   :  { %v3279_v25 = vpop.f32.mrf.mxu1 }
 0x332   :  { %v3281_v26 = vpop.f32.mrf.mxu1 }
 0x334   :  { %v3283_v27 = vpop.f32.mrf.mxu1 }
 0x336   :  { %v2696_v28 = vpop.f32.mrf.mxu1 }
 0x337   :  { %v1578_v13 = vadd.f32 %v2696_v28, %v3308_v49 }
 0x338   :  { %v3285_v29 = vpop.f32.mrf.mxu1 }
 0x33a   :  { %v2699_v30 = vpop.f32.mrf.mxu1 }
 0x33b   :  { %v1588_v62 = vadd.f32 %v2699_v30, %v3308_v49 }
 0x33c   :  { %v1582_v31 = vpop.f32.mrf.mxu1 }
 0x33d   :  { %v1724_v4 = vmax.f32 %v1588_v62, 0.0  ;;  %v1583_v5 = vadd.f32 %v3308_v49, %v1582_v31 }
 0x33e   :  { %v2702_v32 = vpop.f32.mrf.mxu1 }
 0x33f   :  { %v1598_v50 = vadd.f32 %v2702_v32, %v3308_v49  ;;  %v1723_v14 = vmax.f32 %v1583_v5, 0.0  ;;  %v1722_v32 = vmax.f32 %v1578_v13, 0.0 }
 0x340   :  { %v1592_v33 = vpop.f32.mrf.mxu1 }
 0x341   :  { %v1726_v56 = vmax.f32 %v1598_v50, 0.0  ;;  %v1593_v57 = vadd.f32 %v3308_v49, %v1592_v33  ;;  %v1573_v33 = vadd.f32 %v3308_v49, %v3285_v29 }
 0x342   :  { %v3287_v34 = vpop.f32.mrf.mxu1 }
 0x343   :  { %v1725_v63 = vmax.f32 %v1593_v57, 0.0  ;;  %v1721_v50 = vmax.f32 %v1573_v33, 0.0  ;;  %v1558_v57 = vadd.f32 %v3277_v24, %v3308_v49  ;;  %v1608_v5 = vadd.f32 %v3287_v34, %v3308_v49 }
 0x344   :  { %v3289_v35 = vpop.f32.mrf.mxu1  ;;  %v1523_v34 = vadd.f32 %v3308_v49, %v3266_v18 }
 0x346   :  { %v3291_v47 = vpop.f32.mrf.mxu1 }
 0x348   :  { %v3293_v36 = vpop.f32.mrf.mxu1 }
 0x34a   :  { %v3295_v38 = vpop.f32.mrf.mxu1 }
 0x34b   :  { %v1628_v24 = vadd.f32 %v3295_v38, %v3308_v49 }
 0x34c   :  { %v3297_v39 = vpop.f32.mrf.mxu1 }
 0x34e   :  { %v3299_v40 = vpop.f32.mrf.mxu1 }
 0x350   :  { %v3301_v41 = vpop.f32.mrf.mxu1 }
 0x352   :  { %v2717_v42 = vpop.f32.mrf.mxu1 }
 0x353   :  { %v1648_v28 = vadd.f32 %v2717_v42, %v3308_v49 }
 0x354   :  { %v3303_v43 = vpop.f32.mrf.mxu1 }
 0x355   :  { %v1643_v29 = vadd.f32 %v3308_v49, %v3303_v43 }
 0x356   :  { %v2720_v44 = vpop.f32.mrf.mxu1 }
 0x357   :  { %v1658_v7 = vadd.f32 %v2720_v44, %v3308_v49 }
 0x358   :  { %v1652_v45 = vpop.f32.mrf.mxu1 }
 0x359   :  { %v1738_v17 = vmax.f32 %v1658_v7, 0.0  ;;  %v1653_v19 = vadd.f32 %v3308_v49, %v1652_v45  ;;  %v1728_v7 = vmax.f32 %v1608_v5, 0.0 }
 0x35a   :  { %v2723_v46 = vpop.f32.mrf.mxu1 }
 0x35b   :  { %v1668_v59 = vadd.f32 %v2723_v46, %v3308_v49  ;;  %v1737_v44 = vmax.f32 %v1653_v19, 0.0 }
 0x35c   :  { %v1662_v48 = vpop.f32.mrf.mxu1 }
 0x35d   :  { %v1740_v1 = vmax.f32 %v1668_v59, 0.0  ;;  %v1663_v2 = vadd.f32 %v3308_v49, %v1662_v48  ;;  %v1568_v48 = vadd.f32 %v3281_v26, %v3308_v49  ;;  %v1563_v26 = vadd.f32 %v3308_v49, %v3283_v27 }
 0x35e   :  { %v2726_v51 = vpop.f32.mrf.mxu1 }
 0x35f   :  { %v1678_v52 = vadd.f32 %v2726_v51, %v3308_v49  ;;  %v1739_v8 = vmax.f32 %v1663_v2, 0.0  ;;  %v1736_v51 = vmax.f32 %v1648_v28, 0.0  ;;  %v1538_v2 = vadd.f32 %v3269_v20, %v3308_v49 }
 0x360   :  { %v1672_v53 = vpop.f32.mrf.mxu1  ;;  %v1528_v20 = vadd.f32 %v3264_v37, %v3308_v49 }
 0x361   :  { %v1742_v54 = vmax.f32 %v1678_v52, 0.0  ;;  %v1673_v55 = vadd.f32 %v3308_v49, %v1672_v53  ;;  %v1720_v53 = vmax.f32 %v1568_v48, 0.0 }
 0x362   :  { %v2729_v58 = vpop.f32.mrf.mxu1 }
 0x363   :  { %v1741_v60 = vmax.f32 %v1673_v55, 0.0  ;;  %2443 = vmatprep.subr.msk.mxu0 %vm71_vm1, %v1742_v54  ;;  %v1688_v42 = vadd.f32 %v2729_v58, %v3308_v49  ;;  %v1638_v54 = vadd.f32 %v3299_v40, %v3308_v49  ;;  %v1735_v55 = vmax.f32 %v1643_v29, 0.0 }
 0x364   :  { %v1682_v61 = vpop.f32.mrf.mxu1  ;;  %2444 = vmatpush3.xpose.msk.msra.mxu0 %vm71_vm1, %v1726_v56  ;;  %v1719_v58 = vmax.f32 %v1563_v26, 0.0  ;;  %v1633_v40 = vadd.f32 %v3308_v49, %v3301_v41 }
 0x365   :  { %2445 = vmatprep.subr.msk.mxu0 %vm71_vm1, %v1741_v60  ;;  %v1744_v43 = vmax.f32 %v1688_v42, 0.0  ;;  %v1683_v56 = vadd.f32 %v3308_v49, %v1682_v61  ;;  %v1734_v27 = vmax.f32 %v1638_v54, 0.0  ;;  %v1718_v60 = vmax.f32 %v1558_v57, 0.0 }
 0x366   :  { %v2732_v0 = vpop.f32.mrf.mxu1  ;;  %v1553_v61 = vadd.f32 %v3308_v49, %v3279_v25  ;;  %v1733_v62 = vmax.f32 %v1633_v40, 0.0  ;;  %v1623_v25 = vadd.f32 %v3308_v49, %v3297_v39 }
 0x367   :  { %v1698_v30 = vadd.f32 %v2732_v0, %v3308_v49  ;;  %v1743_v59 = vmax.f32 %v1683_v56, 0.0  ;;  %v1543_v0 = vadd.f32 %v3308_v49, %v3275_v23  ;;  %v1714_v23 = vmax.f32 %v1538_v2, 0.0 }
 0x368   :  { %v1692_v3 = vpop.f32.mrf.mxu1  ;;  %2446 = vmatpush3.xpose.msk.msra.mxu0 %vm71_vm1, %v1725_v63  ;;  %v1717_v41 = vmax.f32 %v1553_v61, 0.0  ;;  %v1732_v63 = vmax.f32 %v1628_v24, 0.0 }
 0x369   :  { %2447 = vmatprep.subr.msk.mxu0 %vm71_vm1, %v1740_v1  ;;  %v1746_v46 = vmax.f32 %v1698_v30, 0.0  ;;  %v1693_v45 = vadd.f32 %v3308_v49, %v1692_v3  ;;  %v1618_v1 = vadd.f32 %v3291_v47, %v3308_v49  ;;  %v1715_v39 = vmax.f32 %v1543_v0, 0.0 }
 0x36a   :  { %v2735_v6 = vpop.f32.mrf.mxu1  ;;  %v1533_v47 = vadd.f32 %v3308_v49, %v3271_v21  ;;  %v1712_v21 = vmax.f32 %v1528_v20, 0.0 }
 0x36b   :  { %v1708_v9 = vadd.f32 %v2735_v6, %v3308_v49  ;;  %v1745_v52 = vmax.f32 %v1693_v45, 0.0  ;;  %v1730_v3 = vmax.f32 %v1618_v1, 0.0 }
 0x36c   :  { %v1702_v10 = vpop.f32.mrf.mxu1  ;;  %2448 = vmatpush3.xpose.msk.msra.mxu0 %vm71_vm1, %v1724_v4  ;;  %v1613_v4 = vadd.f32 %v3308_v49, %v3293_v36  ;;  %v1713_v36 = vmax.f32 %v1533_v47, 0.0 }
 0x36d   :  { %v1748_v11 = vmax.f32 %v1708_v9, 0.0  ;;  %v1703_v12 = vadd.f32 %v3308_v49, %v1702_v10  ;;  %2449 = vmatprep.subr.msk.mxu0 %vm71_vm1, %v1739_v8  ;;  %v1603_v8 = vadd.f32 %v3308_v49, %v3289_v35  ;;  %v1711_v10 = vmax.f32 %v1523_v34, 0.0 }
 0x36e   :  { %v1729_v6 = vmax.f32 %v1613_v4, 0.0 }
 0x36f   :  { %v1747_v31 = vmax.f32 %v1703_v12, 0.0  ;;  %2737 = vmatpush3.xpose.msk.msra.mxu1 %vm71_vm1, %v1748_v11  ;;  %v1727_v9 = vmax.f32 %v1603_v8, 0.0  ;;  %v1756_v11 = vlaneseq }
 0x370   :  { %2450 = vmatpush3.xpose.msk.msra.mxu0 %vm71_vm1, %v1723_v14  ;;  %2738 = vmatprep.subr.mxu1 %v2779_v15  ;;  %v1754_v14 = vpop.permute.xlu0 %1753 }
 0x371   :  { %2451 = vmatprep.subr.msk.mxu0 %vm71_vm1, %v1738_v17  ;;  %v1757_v12 = vshrl.u32 %v1756_v11, 7  ;;  %v2782_v17 = vmov 1966171168   ;;  %vm2050_vm3 = vcmp.lt.s32.totalorder %v1756_v11, 304 }
 0x372   :  { %v2026_v19 = vunpack.c.l.s4 %v2782_v17 }
 0x373   :  { %2739 = vmatpush3.xpose.msk.msra.mxu1 %vm71_vm1, %v1747_v31  ;;  %v1758_v13 = vsub.s32 0, %v1757_v12 }
 0x374   :  { %2452 = vmatpush3.xpose.msk.msra.mxu0 %vm71_vm1, %v1722_v32  ;;  %2740 = vmatprep.subr.mxu1 %v2779_v15  ;;  %v2027_v30 = vunpack.c.0.s8 %v2026_v19 }
 0x375   :  { %2453 = vmatprep.subr.msk.mxu0 %vm71_vm1, %v1737_v44  ;;  %v1759_v18 = vrot.slane %v1754_v14, %v1758_v13 }
 0x376   :  { %v2030_v44 = vsub.s32 %v2027_v30, %v1757_v12 }
 0x377   :  { %2741 = vmatpush3.xpose.msk.msra.mxu1 %vm71_vm1, %v1746_v46 }
 0x378   :  { %2454 = vmatpush3.xpose.msk.msra.mxu0 %vm71_vm1, %v1721_v50  ;;  %2742 = vmatprep.subr.mxu1 %v2779_v15 }
 0x379   :  { %2455 = vmatprep.subr.msk.mxu0 %vm71_vm1, %v1736_v51 }
 0x37b   :  { %2743 = vmatpush3.xpose.msk.msra.mxu1 %vm71_vm1, %v1745_v52 }
 0x37c   :  { %2456 = vmatpush3.xpose.msk.msra.mxu0 %vm71_vm1, %v1720_v53  ;;  %2744 = vmatprep.subr.mxu1 %v2779_v15 }
 0x37d   :  { %2457 = vmatprep.subr.msk.mxu0 %vm71_vm1, %v1735_v55 }
 0x37f   :  { %2745 = vmatpush3.xpose.msk.msra.mxu1 %vm71_vm1, %v1744_v43 }
 0x380   :  { %2458 = vmatpush3.xpose.msk.msra.mxu0 %vm71_vm1, %v1719_v58  ;;  %2746 = vmatprep.subr.mxu1 %v2779_v15  ;;  %v1548_v15 = vadd.f32 %v3273_v22, %v3308_v49  ;;  %v1731_v22 = vmax.f32 %v1623_v25, 0.0 }
 0x381   :  { %2459 = vmatprep.subr.msk.mxu0 %vm71_vm1, %v1734_v27 }
 0x382   :  { %v1716_v38 = vmax.f32 %v1548_v15, 0.0 }
 0x383   :  { %2747 = vmatpush3.xpose.msk.msra.mxu1 %vm71_vm1, %v1743_v59 }
 0x384   :  { %2460 = vmatpush3.xpose.msk.msra.mxu0 %vm71_vm1, %v1718_v60 }
 0x385   :  { %2461 = vmatprep.subr.msk.mxu0 %vm71_vm1, %v1733_v62 }
 0x386   :  { %2749 = vmatmul.mubr.msk.f32.vlgmr.msra.gmra.mxu1 %vm71_vm1, %v3260_v16 }
 0x388   :  { %2462 = vmatpush3.xpose.msk.msra.mxu0 %vm71_vm1, %v1717_v41 }
 0x389   :  { %2463 = vmatprep.subr.msk.mxu0 %vm71_vm1, %v1732_v63 }
 0x38c   :  { %2464 = vmatpush3.xpose.msk.msra.mxu0 %vm71_vm1, %v1716_v38 }
 0x38d   :  { %2465 = vmatprep.subr.msk.mxu0 %vm71_vm1, %v1731_v22 }
 0x390   :  { %2466 = vmatpush3.xpose.msk.msra.mxu0 %vm71_vm1, %v1715_v39 }
 0x391   :  { %2467 = vmatprep.subr.msk.mxu0 %vm71_vm1, %v1730_v3 }
 0x394   :  { %2468 = vmatpush3.xpose.msk.msra.mxu0 %vm71_vm1, %v1714_v23 }
 0x395   :  { %2469 = vmatprep.subr.msk.mxu0 %vm71_vm1, %v1729_v6 }
 0x398   :  { %2470 = vmatpush3.xpose.msk.msra.mxu0 %vm71_vm1, %v1713_v36 }
 0x399   :  { %2471 = vmatprep.subr.msk.mxu0 %vm71_vm1, %v1728_v7 }
 0x39c   :  { %2472 = vmatpush3.xpose.msk.msra.mxu0 %vm71_vm1, %v1712_v21 }
 0x39d   :  { %2473 = vmatprep.subr.msk.mxu0 %vm71_vm1, %v1727_v9 }
 0x3a0   :  { %2474 = vmatpush3.xpose.msk.msra.mxu0 %vm71_vm1, %v1711_v10 }
 0x3a3   :  { %2476 = vmatmul.mubr.msk.f32.vlgmr.msra.gmra.mxu0 %vm71_vm1, %v3260_v16 }
 0x446   :  { %v2014_v37 = vpop.f32.mrf.mxu1 }
 0x447   :  { %v2015_v32 = vadd.f32 %v2014_v37, %v1759_v18 }
 0x448   :  { %v2750_v35 = vpop.f32.mrf.mxu1 }
 0x449   :  { %v2020_v48 = vmax.f32 %v2015_v32, 0.0 }
 0x44b   :  { %v2038_v51 = vrot.slane %v2020_v48, %v2030_v44 }
 0x463   :  { %v1943_v49 = vpop.f32.mrf.mxu0 }
 0x464   :  { %v1944_v31 = vadd.f32 %v1943_v49, %v1759_v18 }
 0x465   :  { %v1945_v33 = vpop.f32.mrf.mxu0 }
 0x466   :  { %v1946_v28 = vadd.f32 %v1945_v33, %v1759_v18  ;;  %v2018_v46 = vmax.f32 %v1944_v31, 0.0 }
 0x468   :  { %v2019_v45 = vmax.f32 %v1946_v28, 0.0 }
 0x46a   :  { %v2024_v16 = vcombine.low %v2018_v46, %v2019_v45 }
 0x46c   :  { %v2031_v50 = vrot.slane %v2024_v16, %v2030_v44 }
 0x46e   :  { %v2039_v29 = vcombine.low %v2031_v50, %v2038_v51 }
 0x470   :  { %v2046_v42 = vrot.slane %v2039_v29, %v2030_v44 }
 0x472   :  { %2052 = vst.msk [vmem:[#allocation3] sm:$0x7] %vm2050_vm3, %v2046_v42 }
 0x473   :  { %2768 = shalt.err (!%p2765_p4)
}
 0x474   :  { %2062 = dma.vmem_to_hbm [thread:$0]  %s2060_s23, 48, %s3423_s5, [#allocation4]  }
 0x475   :  { %2777 = dma.done.wait [#allocation4], 48  }
 0x476   :  { %2778 = vsyncadd [#allocation4], 4294967248 }
 0x477   :  { %2066 = vsyncpa [#allocation4], 1 }

</bundles_post_ra>
